<compile_context>
chip_gen: v7x
topology: tpu7x:2x2x1
jax: 0.10.0
libtpu: 0.0.40
codegen_flags: <defaults>
</compile_context>

<pallas_src>
import functools

import jax
import jax.numpy as jnp
from jax import lax
from jax.experimental import pallas as pl
from jax.experimental.pallas import tpu as pltpu

_EPS = 1e-8  # matches torch.nn.CosineSimilarity default eps


def _round_up(x, m):
    return (x + m - 1) // m * m


def similar_kernel(x1_ref, x2_ref, w_ref, b_ref, o_ref):
    w = w_ref[...]                       # [H, H]  (resident across the grid)
    b = b_ref[...]                       # [1, H]
    # Shared fc1 + ReLU for both branches (MXU matmuls, f32 accumulate).
    h1 = jnp.maximum(
        jnp.dot(x1_ref[...], w, preferred_element_type=jnp.float32) + b, 0.0)
    h2 = jnp.maximum(
        jnp.dot(x2_ref[...], w, preferred_element_type=jnp.float32) + b, 0.0)
    # Cosine similarity along the hidden axis (lane reductions -> XLU slot).
    dot = jnp.sum(h1 * h2, axis=-1, keepdims=True)     # [TB, 1]
    s1 = jnp.sum(h1 * h1, axis=-1, keepdims=True)      # ||h1||^2
    s2 = jnp.sum(h2 * h2, axis=-1, keepdims=True)      # ||h2||^2
    # cos = dot / max(||h1||*||h2||, eps) == dot * rsqrt(max(s1*s2, eps^2))
    inv = lax.rsqrt(jnp.maximum(s1 * s2, _EPS * _EPS))  # EUP
    o_ref[...] = (dot * inv).astype(o_ref.dtype)


@functools.partial(jax.jit, static_argnames=("block_b",))
def similar_classifier(x1, x2, w_t, b, *, block_b=512):
    """x1, x2: [B, H]; w_t: [H, H] (= fc1.weight.T); b: [1, H]. Returns [B]."""
    B, H = x1.shape
    # Batch tile: multiple of 8 sublanes, capped at block_b.
    TB = min(block_b, _round_up(B, 8))
    Bp = _round_up(B, TB)
    if Bp != B:
        pad = ((0, Bp - B), (0, 0))
        x1 = jnp.pad(x1, pad)
        x2 = jnp.pad(x2, pad)

    # Advisory cost hint for XLA's scheduler (whole custom call).
    flops = 2 * (2 * Bp * H * H) + 8 * Bp * H
    bytes_accessed = (2 * Bp * H + H * H + H + Bp) * 4
    cost = pl.CostEstimate(flops=flops, transcendentals=Bp,
                           bytes_accessed=bytes_accessed)

    out = pl.pallas_call(
        similar_kernel,
        out_shape=jax.ShapeDtypeStruct((Bp, 1), jnp.float32),
        grid_spec=pltpu.PrefetchScalarGridSpec(
            num_scalar_prefetch=0,
            grid=(Bp // TB,),
            in_specs=[
                pl.BlockSpec((TB, H), lambda i: (i, 0)),   # x1 batch tile
                pl.BlockSpec((TB, H), lambda i: (i, 0)),   # x2 batch tile
                pl.BlockSpec((H, H), lambda i: (0, 0)),    # W^T pinned/resident
                pl.BlockSpec((1, H), lambda i: (0, 0)),    # bias pinned/resident
            ],
            out_specs=pl.BlockSpec((TB, 1), lambda i: (i, 0)),
        ),
        compiler_params=pltpu.CompilerParams(
            dimension_semantics=("parallel",)),
        cost_estimate=cost,
    )(x1, x2, w_t, b)
    return out[:B, 0]


def reference(x1, x2, w_t, b, eps=_EPS):
    hp = lax.Precision.HIGHEST
    h1 = jnp.maximum(jnp.dot(x1, w_t, precision=hp) + b, 0.0)
    h2 = jnp.maximum(jnp.dot(x2, w_t, precision=hp) + b, 0.0)
    num = jnp.sum(h1 * h2, axis=1)
    den = jnp.sqrt(jnp.maximum(jnp.sum(h1 * h1, axis=1) * jnp.sum(h2 * h2, axis=1),
                               eps * eps))
    return num / den


if __name__ == "__main__":
    hidden_size = 32
    batch = 8

    key = jax.random.PRNGKey(0)
    k1, k2, kw, kb = jax.random.split(key, 4)

    x1 = jax.random.normal(k1, (batch, hidden_size), dtype=jnp.float32)
    x2 = jax.random.normal(k2, (batch, hidden_size), dtype=jnp.float32)

    # Deterministic params (shapes match nn.Linear(hidden, hidden)).
    # PyTorch weight is [out, in]; we store the transpose [in, out].
    bound = 1.0 / jnp.sqrt(hidden_size)
    w_t = jax.random.uniform(kw, (hidden_size, hidden_size), jnp.float32, -bound, bound)
    b = jax.random.uniform(kb, (1, hidden_size), jnp.float32, -bound, bound)

    out = similar_classifier(x1, x2, w_t, b)
    out = jax.block_until_ready(out)
    ref = reference(x1, x2, w_t, b)
    assert out.shape == (batch,), out.shape
    assert jnp.allclose(out, ref, atol=1e-4, rtol=1e-4), (out, ref)

    # Exercise the gridded + padded path (batch not a multiple of the tile).
    big_batch = 300
    kb1, kb2 = jax.random.split(jax.random.PRNGKey(1), 2)
    xb1 = jax.random.normal(kb1, (big_batch, hidden_size), dtype=jnp.float32)
    xb2 = jax.random.normal(kb2, (big_batch, hidden_size), dtype=jnp.float32)
    out_big = jax.block_until_ready(
        similar_classifier(xb1, xb2, w_t, b, block_b=128))
    ref_big = reference(xb1, xb2, w_t, b)
    assert out_big.shape == (big_batch,), out_big.shape
    assert jnp.allclose(out_big, ref_big, atol=1e-4, rtol=1e-4), (out_big, ref_big)

    print("KERNEL_OK")
</pallas_src>

<mosaic_0001>
module attributes {stable_mosaic.version = 11 : i64} {
  func.func @similar_kernel(%arg0: i32, %arg1: memref<8x32xf32, #tpu.memory_space<vmem>>, %arg2: memref<8x32xf32, #tpu.memory_space<vmem>>, %arg3: memref<32x32xf32, #tpu.memory_space<vmem>>, %arg4: memref<1x32xf32, #tpu.memory_space<vmem>>, %arg5: memref<8x1xf32, #tpu.memory_space<vmem>>) attributes {dimension_semantics = [#tpu.dimension_semantics<parallel>], iteration_bounds = array<i64: 1>, scalar_prefetch = 0 : i64, scratch_operands = 0 : i64, tpu.core_type = #tpu.core_type<tc>, window_params = [{transform_indices = @transform_0, window_bounds = array<i64: 8, 32>}, {transform_indices = @transform_1, window_bounds = array<i64: 8, 32>}, {pipeline_mode = #tpu.pipeline_mode<synchronous>, transform_indices = @transform_2, window_bounds = array<i64: 32, 32>}, {pipeline_mode = #tpu.pipeline_mode<synchronous>, transform_indices = @transform_3, window_bounds = array<i64: 1, 32>}, {transform_indices = @transform_4, window_bounds = array<i64: 8, 1>}]} {
    %c0 = arith.constant 0 : index
    %c0_0 = arith.constant 0 : index
    %0 = vector.load %arg3[%c0, %c0_0] : memref<32x32xf32, #tpu.memory_space<vmem>>, vector<32x32xf32>
    %c0_1 = arith.constant 0 : index
    %c0_2 = arith.constant 0 : index
    %1 = vector.load %arg4[%c0_1, %c0_2] : memref<1x32xf32, #tpu.memory_space<vmem>>, vector<1x32xf32>
    %c0_3 = arith.constant 0 : index
    %c0_4 = arith.constant 0 : index
    %2 = vector.load %arg1[%c0_3, %c0_4] : memref<8x32xf32, #tpu.memory_space<vmem>>, vector<8x32xf32>
    %cst = arith.constant dense<0.000000e+00> : vector<8x32xf32>
    %3 = tpu.matmul %2, %0, %cst {dimension_numbers = #tpu.dot_dimension_numbers<[1], [0], [0], [1], [0, 0, 1, 1], [], []>} : vector<8x32xf32>, vector<32x32xf32>, vector<8x32xf32> -> vector<8x32xf32>
    %4 = vector.broadcast %1 : vector<1x32xf32> to vector<8x32xf32>
    %5 = arith.addf %3, %4 : vector<8x32xf32>
    %cst_5 = arith.constant 0.000000e+00 : f32
    %6 = vector.broadcast %cst_5 : f32 to vector<8x32xf32>
    %7 = arith.maximumf %5, %6 : vector<8x32xf32>
    %c0_6 = arith.constant 0 : index
    %c0_7 = arith.constant 0 : index
    %8 = vector.load %arg2[%c0_6, %c0_7] : memref<8x32xf32, #tpu.memory_space<vmem>>, vector<8x32xf32>
    %cst_8 = arith.constant dense<0.000000e+00> : vector<8x32xf32>
    %9 = tpu.matmul %8, %0, %cst_8 {dimension_numbers = #tpu.dot_dimension_numbers<[1], [0], [0], [1], [0, 0, 1, 1], [], []>} : vector<8x32xf32>, vector<32x32xf32>, vector<8x32xf32> -> vector<8x32xf32>
    %10 = vector.broadcast %1 : vector<1x32xf32> to vector<8x32xf32>
    %11 = arith.addf %9, %10 : vector<8x32xf32>
    %cst_9 = arith.constant 0.000000e+00 : f32
    %12 = vector.broadcast %cst_9 : f32 to vector<8x32xf32>
    %13 = arith.maximumf %11, %12 : vector<8x32xf32>
    %14 = arith.mulf %7, %13 : vector<8x32xf32>
    %cst_10 = arith.constant dense<0.000000e+00> : vector<8xf32>
    %15 = vector.multi_reduction <add>, %14, %cst_10 [1] : vector<8x32xf32> to vector<8xf32>
    %16 = vector.shape_cast %15 : vector<8xf32> to vector<8x1xf32>
    %17 = arith.mulf %7, %7 : vector<8x32xf32>
    %cst_11 = arith.constant dense<0.000000e+00> : vector<8xf32>
    %18 = vector.multi_reduction <add>, %17, %cst_11 [1] : vector<8x32xf32> to vector<8xf32>
    %19 = vector.shape_cast %18 : vector<8xf32> to vector<8x1xf32>
    %20 = arith.mulf %13, %13 : vector<8x32xf32>
    %cst_12 = arith.constant dense<0.000000e+00> : vector<8xf32>
    %21 = vector.multi_reduction <add>, %20, %cst_12 [1] : vector<8x32xf32> to vector<8xf32>
    %22 = vector.shape_cast %21 : vector<8xf32> to vector<8x1xf32>
    %23 = arith.mulf %19, %22 : vector<8x1xf32>
    %cst_13 = arith.constant 1.000000e-16 : f32
    %24 = vector.broadcast %cst_13 : f32 to vector<8x1xf32>
    %25 = arith.maximumf %23, %24 : vector<8x1xf32>
    %26 = math.rsqrt %25 : vector<8x1xf32>
    %27 = arith.mulf %16, %26 : vector<8x1xf32>
    %c0_14 = arith.constant 0 : index
    %c0_15 = arith.constant 0 : index
    %28 = vector.load %arg5[%c0_14, %c0_15] : memref<8x1xf32, #tpu.memory_space<vmem>>, vector<8x1xf32>
    tpu.vector_store %arg5[%c0_14, %c0_15], %27 {strides = array<i32>} : memref<8x1xf32, #tpu.memory_space<vmem>>, vector<8x1xf32>,
    return
  }
  func.func @transform_0(%arg0: i32) -> (i32, i32) {
    %c0_i32 = arith.constant 0 : i32
    %c0_i32_0 = arith.constant 0 : i32
    return %arg0, %c0_i32 : i32, i32
  }
  func.func @transform_1(%arg0: i32) -> (i32, i32) {
    %c0_i32 = arith.constant 0 : i32
    %c0_i32_0 = arith.constant 0 : i32
    return %arg0, %c0_i32 : i32, i32
  }
  func.func @transform_2(%arg0: i32) -> (i32, i32) {
    %c0_i32 = arith.constant 0 : i32
    %c0_i32_0 = arith.constant 0 : i32
    %c0_i32_1 = arith.constant 0 : i32
    return %c0_i32, %c0_i32_0 : i32, i32
  }
  func.func @transform_3(%arg0: i32) -> (i32, i32) {
    %c0_i32 = arith.constant 0 : i32
    %c0_i32_0 = arith.constant 0 : i32
    %c0_i32_1 = arith.constant 0 : i32
    return %c0_i32, %c0_i32_0 : i32, i32
  }
  func.func @transform_4(%arg0: i32) -> (i32, i32) {
    %c0_i32 = arith.constant 0 : i32
    %c0_i32_0 = arith.constant 0 : i32
    return %arg0, %c0_i32 : i32, i32
  }
}

</mosaic_0001>

<bundles_post_ra>
// kernel: similar_classifier.1
= control target key start
LH: loop header
LB: loop body
LE: loop exit
PB: predicated region body
PF: predicated region fallthrough
CT: control target
= control target key end

     0   :  { %9 = vsyncpa [#allocation3], 0  ;;  %s447_s0 = inlined_call_operand.hbm [shape: f32[8,32], index: 0, kind: input, shape index: {}]   ;;  %s448_s1 = inlined_call_operand.hbm [shape: f32[8,32], index: 1, kind: input, shape index: {}]   ;;  %s449_s2 = inlined_call_operand.hbm [shape: f32[32,32], index: 2, kind: input, shape index: {}]   ;;  %s450_s3 = inlined_call_operand.vmem [shape: f32[1,32], index: 3, kind: input, shape index: {}]   ;;  %s451_s4 = inlined_call_operand.vmem [shape: f32[8,1], index: 4, kind: output, shape index: {}]  }
   0x1   :  { %10 = vsyncpa [#allocation5], 0  ;;  %s367_s15 = smov [#allocation4]   ;;  %s368_s17 = smov [#allocation2]  }
   0x2   :  { %s27_s16 = sshll.u32 %s367_s15, 4  ;;  %s17_s18 = sshll.u32 %s368_s17, 4  ;;  %s28_s16 = int_to_ptr.vmem [resolvable:$true] %s27_s16  ;;  %s18_s18 = int_to_ptr.vmem [resolvable:$true] %s17_s18 }
   0x3   :  { %s297_s21 = scalar_lea.hbm %s448_s1, 128 }
   0x4   :  { %p298_p0 = scmp.ne.s32.totalorder %s448_s1, %s297_s21  ;;  %p301_p1 = scmp.lt.u32.totalorder %s297_s21, %s448_s1 }
   0x6   :  { %p303_p2 = pnand %p301_p1, %p298_p0 }
   0x8   :  { %306 = shalt.err (!%p303_p2)
}
   0x9   :  { %s307_s26 = scalar_lea.vmem %s28_s16, 128  ;;  %p312_p4 = scmp.lt.s32.totalorder %s28_s16, %s28_s16 }
   0xa   :  { %p308_p3 = scmp.ne.s32.totalorder %s28_s16, %s307_s26  ;;  %p313_p5 = scmp.lt.s32.totalorder %s307_s26, %s307_s26 }
   0xc   :  { %p314_p6 = por %p313_p5, %p312_p4 }
   0xe   :  { %p315_p7 = pnand %p314_p6, %p308_p3 }
  0x10   :  { %318 = shalt.err (!%p315_p7)
}
  0x11   :  { %30 = dma.hbm_to_vmem [thread:$0]  %s448_s1, 128, %s28_s16, [#allocation5]  }
  0x12   :  { %s319_s5 = scalar_lea.hbm %s447_s0, 128 }
  0x13   :  { %p320_p8 = scmp.ne.s32.totalorder %s447_s0, %s319_s5  ;;  %p323_p9 = scmp.lt.u32.totalorder %s319_s5, %s447_s0 }
  0x15   :  { %p325_p10 = pnand %p323_p9, %p320_p8 }
  0x17   :  { %328 = shalt.err (!%p325_p10)
}
  0x18   :  { %s329_s10 = scalar_lea.vmem %s18_s18, 128  ;;  %p334_p12 = scmp.lt.s32.totalorder %s18_s18, %s18_s18 }
  0x19   :  { %p330_p11 = scmp.ne.s32.totalorder %s18_s18, %s329_s10  ;;  %p335_p13 = scmp.lt.s32.totalorder %s329_s10, %s329_s10 }
  0x1b   :  { %p336_p0 = por %p335_p13, %p334_p12 }
  0x1d   :  { %p337_p1 = pnand %p336_p0, %p330_p11 }
  0x1f   :  { %340 = shalt.err (!%p337_p1)
}
  0x20   :  { %20 = dma.hbm_to_vmem [thread:$0]  %s447_s0, 128, %s18_s18, [#allocation3]  }
  0x21   :  { %s369_s12 = smov [#allocation6]   ;;  %s341_s16 = scalar_lea.hbm %s449_s2, 512 }
  0x22   :  { %s36_s13 = sshll.u32 %s369_s12, 4  ;;  %p342_p2 = scmp.ne.s32.totalorder %s449_s2, %s341_s16  ;;  %s37_s13 = int_to_ptr.vmem [resolvable:$true] %s36_s13 }
  0x23   :  { %p345_p3 = scmp.lt.u32.totalorder %s341_s16, %s449_s2 }
  0x25   :  { %p347_p4 = pnand %p345_p3, %p342_p2 }
  0x27   :  { %350 = shalt.err (!%p347_p4)
}
  0x28   :  { %s351_s22 = scalar_lea.vmem %s37_s13, 512  ;;  %p356_p6 = scmp.lt.s32.totalorder %s37_s13, %s37_s13 }
  0x29   :  { %p352_p5 = scmp.ne.s32.totalorder %s37_s13, %s351_s22  ;;  %p357_p7 = scmp.lt.s32.totalorder %s351_s22, %s351_s22 }
  0x2b   :  { %p358_p8 = por %p357_p7, %p356_p6 }
  0x2d   :  { %p359_p9 = pnand %p358_p8, %p352_p5 }
  0x2f   :  { %362 = shalt.err (!%p359_p9)
}
  0x30   :  { %s370_s0 = smov 128   ;;  %s371_s18 = smov 8  }
  0x31   :  { %42 = dma.hbm_to_vmem [thread:$0]  %s449_s2, 512, %s37_s13, [#allocation5], %s370_s0, %s370_s0, %s371_s18  }
  0x32   :  { %363 = dma.done.wait [#allocation3], 128  }
  0x33   :  { %364 = vsyncadd [#allocation3], 4294967168 }
  0x34   :  { %365 = dma.done.wait [#allocation5], 640  }
  0x35   :  { %366 = vsyncadd [#allocation5], 4294966656  ;;  %v372_v0 = vmov 0.0|0.0   ;;  %vm373_vm0 = vmmov 0   ;;  %v374_v1 = vmov 0.0   ;;  %v54_v2 = vld [vmem:[#allocation6] sm:$0xff] }
  0x36   :  { %275 = vmatprep.subr.bf16.mxu0 %v372_v0  ;;  %281 = vmatprep.subr.bf16.mxu1 %v372_v0  ;;  %v55_v3 = vld [vmem:[#allocation6 + $0x8] sm:$0xff]  ;;  %v56_v4 = vld [vmem:[#allocation6 + $0x10] sm:$0xff]  ;;  %v57_v6 = vld [vmem:[#allocation6 + $0x18] sm:$0xff]  ;;  %vm66_vm1 = vcmask 261120   ;;  %vm232_vm2 = vcmask 7168  }
  0x37   :  { %261 = vmatprep.mubr.msk.f32.mxu0 %vm373_vm0, %v374_v1  ;;  %272 = vmatprep.mubr.msk.f32.mxu1 %vm373_vm0, %v374_v1  ;;  %v276_v5 = vpack.c.bf16 %v55_v3, %v54_v2  ;;  %v279_v7 = vpack.c.bf16 %v57_v6, %v56_v4  ;;  %v59_v8 = vld [vmem:[#allocation2] sm:$0xff]  ;;  %v141_v9 = vld [vmem:[#allocation4] sm:$0xff] }
  0x38   :  { %v240_v10 = vld [vmem:[%s450_s3] ss:$0 sm:$0xff] }
  0x39   :  { %277 = vmatpush3.bf16.msra.mxu0 %v276_v5  ;;  %283 = vmatpush3.bf16.msra.mxu1 %v276_v5 }
  0x3a   :  { %278 = vmatprep.subr.bf16.mxu0 %v372_v0  ;;  %284 = vmatprep.subr.bf16.mxu1 %v372_v0 }
  0x3d   :  { %280 = vmatpush3.bf16.msra.mxu0 %v279_v7  ;;  %286 = vmatpush3.bf16.msra.mxu1 %v279_v7 }
  0x40   :  { %262 = vmatmul.mubr.msk.f32.vlgmr.msra.gmra.mrb[0].mxu0 %vm66_vm1, %v59_v8  ;;  %273 = vmatmul.mubr.msk.f32.vlgmr.msra.gmra.mrb[0].mxu1 %vm66_vm1, %v141_v9 }
 0x113   :  { %v136_v11 = vpop.f32.mrb[0].mxu0  ;;  %v211_v12 = vpop.f32.mrb[0].mxu1 }
 0x114   :  { %v137_v13 = vadd.f32 %v240_v10, %v136_v11  ;;  %v212_v14 = vadd.f32 %v240_v10, %v211_v12  ;;  %v263_v15 = vpop.f32.mrb[1].mxu0  ;;  %v274_v16 = vpop.f32.mrb[1].mxu1 }
 0x116   :  { %v140_v17 = vmax.f32 %v137_v13, 0.0  ;;  %v215_v18 = vmax.f32 %v212_v14, 0.0 }
 0x118   :  { %v220_v19 = vmul.f32 %v140_v17, %v140_v17  ;;  %v216_v20 = vmul.f32 %v215_v18, %v140_v17  ;;  %v224_v21 = vmul.f32 %v215_v18, %v215_v18 }
 0x11a   :  { %v221_v22 = vsel %vm66_vm1, %v220_v19, 0.0  ;;  %v217_v23 = vsel %vm66_vm1, %v216_v20, 0.0  ;;  %v225_v24 = vsel %vm66_vm1, %v224_v21, 0.0 }
 0x11b   :  { %222 = vadd.xlane.f32.xlu0 %v221_v22  ;;  %218 = vadd.xlane.f32.xlu1 %v217_v23 }
 0x11f   :  { %226 = vadd.xlane.f32.xlu0 %v225_v24 }
 0x1a8   :  { %v223_v25 = vpop.xlane.xlu0 %222  ;;  %v219_v30 = vpop.xlane.xlu1 %218 }
 0x1ac   :  { %v227_v26 = vpop.xlane.xlu0 %226 }
 0x1ad   :  { %v228_v27 = vmul.f32 %v227_v26, %v223_v25 }
 0x1af   :  { %v229_v28 = vmax.f32 %v228_v27, 1e-16 }
 0x1b1   :  { %295 = vrsqrt.f32 %v229_v28 }
 0x1bb   :  { %v296_v29 = vpop.eup %295 }
 0x1bc   :  { %v231_v31 = vmul.f32 %v296_v29, %v219_v30 }
 0x1be   :  { %233 = vst.msk [vmem:[%s451_s4] sm:$0xff] %vm232_vm2, %v231_v31 }
 0x1bf   :  { %238 = vsyncpa [#allocation3], 1 }
 0x1c0   :  { %239 = vsyncpa [#allocation5], 1 }

</bundles_post_ra>
